<compile_context>
chip_gen: v5e
topology: v5e:2x2
jax: 0.10.0
libtpu: 0.0.40
codegen_flags: <defaults>
</compile_context>

<pallas_src>
import functools

import numpy as np
import jax
import jax.numpy as jnp
from jax.experimental import pallas as pl
from jax.experimental.pallas import tpu as pltpu

EPS = 1e-6


def _round_up(a, b):
    return (a + b - 1) // b * b


# ---------------- one-time parameter packing (hoisted out of the hot path) ----------------
def pack_params(b1, b2, gamma, beta):
    """Pack the four small 1-D params into one (4, max(d_in, d_hid)) f32 block.

    row 0[:d_hid] = b1
    row 1[:d_in]  = b2
    row 2[:d_in]  = LayerNorm gamma
    row 3[:d_in]  = LayerNorm beta
    """
    d_hid = b1.shape[0]
    d_in = b2.shape[0]
    pw = max(d_in, d_hid)
    packed = jnp.zeros((4, pw), jnp.float32)
    packed = packed.at[0, :d_hid].set(b1.astype(jnp.float32))
    packed = packed.at[1, :d_in].set(b2.astype(jnp.float32))
    packed = packed.at[2, :d_in].set(gamma.astype(jnp.float32))
    packed = packed.at[3, :d_in].set(beta.astype(jnp.float32))
    return packed


# ---------------- Pallas kernel ----------------
def _ffn_kernel(x_ref, w1_ref, w2_ref, p_ref, o_ref, *, d_in, d_hid):
    """Fused position-wise FFN forward on one (TM, d_in) activation tile.

    x_ref : [TM, d_in]           activation tile (any float dtype)
    w1_ref: [d_in, d_hid]        PyTorch w_1.weight.T  (VMEM-resident)
    w2_ref: [d_hid, d_in]        PyTorch w_2.weight.T  (VMEM-resident)
    p_ref : [4, max(d_in,d_hid)] packed b1/b2/gamma/beta (f32, VMEM-resident)
    o_ref : [TM, d_in]
    """
    x = x_ref[...]
    x32 = x.astype(jnp.float32)

    b1 = p_ref[0:1, :d_hid]                 # [1, d_hid]
    b2 = p_ref[1:2, :d_in]                  # [1, d_in]
    g = p_ref[2:3, :d_in]                   # [1, d_in]
    b = p_ref[3:4, :d_in]                   # [1, d_in]

    # w_2(relu(w_1(x))) — plain 2-D dots, f32 accumulation on the MXU.
    h = jnp.dot(x, w1_ref[...], preferred_element_type=jnp.float32) + b1
    h = jnp.maximum(h, 0.0)
    y = jnp.dot(h.astype(w2_ref.dtype), w2_ref[...],
                preferred_element_type=jnp.float32) + b2

    # dropout = identity (eval mode); residual add in f32.
    y = y + x32

    # nn.LayerNorm(d_in, eps=1e-6): biased variance over the last axis, f32.
    mu = jnp.mean(y, axis=-1, keepdims=True)
    var = jnp.mean((y - mu) ** 2, axis=-1, keepdims=True)
    out = (y - mu) * jax.lax.rsqrt(var + EPS) * g + b
    o_ref[...] = out.astype(o_ref.dtype)


# ---------------- jit'd forward wrapper ----------------
@functools.partial(jax.jit, static_argnames=("tm",))
def positionwise_ffn(x, w1, w2, packed, *, tm=None):
    """x: [..., d_in]  -> [..., d_in].  `packed` from pack_params()."""
    orig_shape = x.shape
    d_in = orig_shape[-1]
    d_hid = w1.shape[1]
    assert w1.shape == (d_in, d_hid)
    assert w2.shape == (d_hid, d_in)
    assert packed.shape == (4, max(d_in, d_hid))

    m = int(np.prod(orig_shape[:-1]))
    x2 = x.reshape(m, d_in)                      # free row-major reshape

    # Tile size over the token axis: multiple of 8 sublanes, capped at 512
    # rows (sized so double-buffered tiles + resident weights + f32 temps fit
    # comfortably even in v7x's 64 MiB VMEM at realistic d_in/d_hid).
    if tm is None:
        tm = min(512, _round_up(m, 8))
    m_pad = _round_up(m, tm)
    if m_pad != m:
        x2 = jnp.pad(x2, ((0, m_pad - m), (0, 0)))
    grid = (m_pad // tm,)

    itemsize = x2.dtype.itemsize
    w_itemsize = w1.dtype.itemsize
    # VMEM budget estimate: double-buffered x/out tiles + resident weights +
    # packed params + f32 intermediates.
    vmem_est = (2 * 2 * tm * d_in * itemsize
                + 2 * d_in * d_hid * w_itemsize
                + 4 * max(d_in, d_hid) * 4
                + tm * d_hid * 4 + 2 * tm * d_in * 4)
    vmem_limit = int(min(max(2 * vmem_est, 8 << 20), 64 << 20))

    cost = pl.CostEstimate(
        flops=4 * m * d_in * d_hid,
        transcendentals=0,
        bytes_accessed=int(m_pad * d_in * itemsize * 2      # x in + out
                           + 2 * d_in * d_hid * w_itemsize  # w1 + w2
                           + 4 * max(d_in, d_hid) * 4),     # packed params
    )

    kernel = functools.partial(_ffn_kernel, d_in=d_in, d_hid=d_hid)

    out2 = pl.pallas_call(
        kernel,
        out_shape=jax.ShapeDtypeStruct((m_pad, d_in), x.dtype),
        grid=grid,
        in_specs=[
            pl.BlockSpec((tm, d_in), lambda i: (i, 0)),          # streamed tiles
            pl.BlockSpec((d_in, d_hid), lambda i: (0, 0)),       # resident
            pl.BlockSpec((d_hid, d_in), lambda i: (0, 0)),       # resident
            pl.BlockSpec((4, max(d_in, d_hid)), lambda i: (0, 0)),  # resident
        ],
        out_specs=pl.BlockSpec((tm, d_in), lambda i: (i, 0)),
        compiler_params=pltpu.CompilerParams(
            dimension_semantics=("parallel",),   # shard M across v7x's 2 TCs
            vmem_limit_bytes=vmem_limit,
        ),
        cost_estimate=cost,
    )(x2, w1, w2, packed)

    if m_pad != m:
        out2 = out2[:m]
    return out2.reshape(orig_shape)


# ---------------- pure-JAX reference (sanity check) ----------------
def positionwise_ffn_ref(x, w1, b1, w2, b2, gamma, beta):
    h = jnp.maximum(x @ w1 + b1, 0.0)
    y = h @ w2 + b2 + x
    mu = jnp.mean(y, axis=-1, keepdims=True)
    var = jnp.mean((y - mu) ** 2, axis=-1, keepdims=True)
    return (y - mu) / jnp.sqrt(var + EPS) * gamma + beta


if __name__ == "__main__":
    B, L = 2, 8          # batch, sequence length
    D_IN = 32            # d_in  (model width)
    D_HID = 64           # d_hid (inner FFN width)

    key = jax.random.PRNGKey(0)
    kx, kw1, kb1, kw2, kb2 = jax.random.split(key, 5)

    x = jax.random.normal(kx, (B, L, D_IN), dtype=jnp.float32)

    # Linear weights stored as [in, out] == PyTorch weight.T (x @ W + b semantics).
    w1 = 0.1 * jax.random.normal(kw1, (D_IN, D_HID), dtype=jnp.float32)
    b1 = 0.1 * jax.random.normal(kb1, (D_HID,), dtype=jnp.float32)
    w2 = 0.1 * jax.random.normal(kw2, (D_HID, D_IN), dtype=jnp.float32)
    b2 = 0.1 * jax.random.normal(kb2, (D_IN,), dtype=jnp.float32)
    # nn.LayerNorm default affine init: weight=1, bias=0.
    gamma = jnp.ones((D_IN,), jnp.float32)
    beta = jnp.zeros((D_IN,), jnp.float32)

    # One-time parameter packing (module construction time, not per forward).
    packed = pack_params(b1, b2, gamma, beta)

    out = positionwise_ffn(x, w1, w2, packed)
    out = jax.block_until_ready(out)

    ref = positionwise_ffn_ref(x, w1, b1, w2, b2, gamma, beta)
    assert out.shape == (B, L, D_IN)
    np.testing.assert_allclose(np.asarray(out), np.asarray(ref), atol=1e-4, rtol=1e-4)

    print("KERNEL_OK")
</pallas_src>

<mosaic_0001>
module attributes {stable_mosaic.version = 11 : i64} {
  func.func @_ffn_kernel(%arg0: i32, %arg1: memref<16x32xf32, #tpu.memory_space<vmem>>, %arg2: memref<32x64xf32, #tpu.memory_space<vmem>>, %arg3: memref<64x32xf32, #tpu.memory_space<vmem>>, %arg4: memref<4x64xf32, #tpu.memory_space<vmem>>, %arg5: memref<16x32xf32, #tpu.memory_space<vmem>>) attributes {dimension_semantics = [#tpu.dimension_semantics<parallel>], iteration_bounds = array<i64: 1>, scalar_prefetch = 0 : i64, scratch_operands = 0 : i64, tpu.core_type = #tpu.core_type<tc>, window_params = [{transform_indices = @transform_0, window_bounds = array<i64: 16, 32>}, {pipeline_mode = #tpu.pipeline_mode<synchronous>, transform_indices = @transform_1, window_bounds = array<i64: 32, 64>}, {pipeline_mode = #tpu.pipeline_mode<synchronous>, transform_indices = @transform_2, window_bounds = array<i64: 64, 32>}, {pipeline_mode = #tpu.pipeline_mode<synchronous>, transform_indices = @transform_3, window_bounds = array<i64: 4, 64>}, {transform_indices = @transform_4, window_bounds = array<i64: 16, 32>}]} {
    %c0 = arith.constant 0 : index
    %c0_0 = arith.constant 0 : index
    %0 = vector.load %arg1[%c0, %c0_0] : memref<16x32xf32, #tpu.memory_space<vmem>>, vector<16x32xf32>
    %c0_1 = arith.constant 0 : index
    %c0_2 = arith.constant 0 : index
    %1 = vector.load %arg4[%c0_1, %c0_2] : memref<4x64xf32, #tpu.memory_space<vmem>>, vector<1x64xf32>
    %c1 = arith.constant 1 : index
    %c0_3 = arith.constant 0 : index
    %2 = vector.load %arg4[%c1, %c0_3] : memref<4x64xf32, #tpu.memory_space<vmem>>, vector<1x32xf32>
    %c2 = arith.constant 2 : index
    %c0_4 = arith.constant 0 : index
    %3 = vector.load %arg4[%c2, %c0_4] : memref<4x64xf32, #tpu.memory_space<vmem>>, vector<1x32xf32>
    %c3 = arith.constant 3 : index
    %c0_5 = arith.constant 0 : index
    %4 = vector.load %arg4[%c3, %c0_5] : memref<4x64xf32, #tpu.memory_space<vmem>>, vector<1x32xf32>
    %c0_6 = arith.constant 0 : index
    %c0_7 = arith.constant 0 : index
    %5 = vector.load %arg2[%c0_6, %c0_7] : memref<32x64xf32, #tpu.memory_space<vmem>>, vector<32x64xf32>
    %cst = arith.constant dense<0.000000e+00> : vector<16x64xf32>
    %6 = tpu.matmul %0, %5, %cst {dimension_numbers = #tpu.dot_dimension_numbers<[1], [0], [0], [1], [0, 0, 1, 1], [], []>} : vector<16x32xf32>, vector<32x64xf32>, vector<16x64xf32> -> vector<16x64xf32>
    %7 = vector.broadcast %1 : vector<1x64xf32> to vector<16x64xf32>
    %8 = arith.addf %6, %7 : vector<16x64xf32>
    %cst_8 = arith.constant 0.000000e+00 : f32
    %9 = vector.broadcast %cst_8 : f32 to vector<16x64xf32>
    %10 = arith.maximumf %8, %9 : vector<16x64xf32>
    %c0_9 = arith.constant 0 : index
    %c0_10 = arith.constant 0 : index
    %11 = vector.load %arg3[%c0_9, %c0_10] : memref<64x32xf32, #tpu.memory_space<vmem>>, vector<64x32xf32>
    %cst_11 = arith.constant dense<0.000000e+00> : vector<16x32xf32>
    %12 = tpu.matmul %10, %11, %cst_11 {dimension_numbers = #tpu.dot_dimension_numbers<[1], [0], [0], [1], [0, 0, 1, 1], [], []>} : vector<16x64xf32>, vector<64x32xf32>, vector<16x32xf32> -> vector<16x32xf32>
    %13 = vector.broadcast %2 : vector<1x32xf32> to vector<16x32xf32>
    %14 = arith.addf %12, %13 : vector<16x32xf32>
    %15 = arith.addf %14, %0 : vector<16x32xf32>
    %cst_12 = arith.constant dense<0.000000e+00> : vector<16xf32>
    %16 = vector.multi_reduction <add>, %15, %cst_12 [1] : vector<16x32xf32> to vector<16xf32>
    %17 = vector.shape_cast %16 : vector<16xf32> to vector<16x1xf32>
    %cst_13 = arith.constant 3.200000e+01 : f32
    %18 = vector.broadcast %cst_13 : f32 to vector<16x1xf32>
    %19 = arith.divf %17, %18 : vector<16x1xf32>
    %20 = vector.broadcast %19 : vector<16x1xf32> to vector<16x32xf32>
    %21 = arith.subf %15, %20 : vector<16x32xf32>
    %22 = arith.mulf %21, %21 : vector<16x32xf32>
    %cst_14 = arith.constant dense<0.000000e+00> : vector<16xf32>
    %23 = vector.multi_reduction <add>, %22, %cst_14 [1] : vector<16x32xf32> to vector<16xf32>
    %24 = vector.shape_cast %23 : vector<16xf32> to vector<16x1xf32>
    %cst_15 = arith.constant 3.200000e+01 : f32
    %25 = vector.broadcast %cst_15 : f32 to vector<16x1xf32>
    %26 = arith.divf %24, %25 : vector<16x1xf32>
    %27 = vector.broadcast %19 : vector<16x1xf32> to vector<16x32xf32>
    %28 = arith.subf %15, %27 : vector<16x32xf32>
    %cst_16 = arith.constant 9.99999997E-7 : f32
    %29 = vector.broadcast %cst_16 : f32 to vector<16x1xf32>
    %30 = arith.addf %26, %29 : vector<16x1xf32>
    %31 = math.rsqrt %30 : vector<16x1xf32>
    %32 = vector.broadcast %31 : vector<16x1xf32> to vector<16x32xf32>
    %33 = arith.mulf %28, %32 : vector<16x32xf32>
    %34 = vector.broadcast %3 : vector<1x32xf32> to vector<16x32xf32>
    %35 = arith.mulf %33, %34 : vector<16x32xf32>
    %36 = vector.broadcast %4 : vector<1x32xf32> to vector<16x32xf32>
    %37 = arith.addf %35, %36 : vector<16x32xf32>
    %c0_17 = arith.constant 0 : index
    %c0_18 = arith.constant 0 : index
    %38 = vector.load %arg5[%c0_17, %c0_18] : memref<16x32xf32, #tpu.memory_space<vmem>>, vector<16x32xf32>
    tpu.vector_store %arg5[%c0_17, %c0_18], %37 {strides = array<i32>} : memref<16x32xf32, #tpu.memory_space<vmem>>, vector<16x32xf32>,
    return
  }
  func.func @transform_0(%arg0: i32) -> (i32, i32) {
    %c0_i32 = arith.constant 0 : i32
    %c0_i32_0 = arith.constant 0 : i32
    return %arg0, %c0_i32 : i32, i32
  }
  func.func @transform_1(%arg0: i32) -> (i32, i32) {
    %c0_i32 = arith.constant 0 : i32
    %c0_i32_0 = arith.constant 0 : i32
    %c0_i32_1 = arith.constant 0 : i32
    return %c0_i32, %c0_i32_0 : i32, i32
  }
  func.func @transform_2(%arg0: i32) -> (i32, i32) {
    %c0_i32 = arith.constant 0 : i32
    %c0_i32_0 = arith.constant 0 : i32
    %c0_i32_1 = arith.constant 0 : i32
    return %c0_i32, %c0_i32_0 : i32, i32
  }
  func.func @transform_3(%arg0: i32) -> (i32, i32) {
    %c0_i32 = arith.constant 0 : i32
    %c0_i32_0 = arith.constant 0 : i32
    %c0_i32_1 = arith.constant 0 : i32
    return %c0_i32, %c0_i32_0 : i32, i32
  }
  func.func @transform_4(%arg0: i32) -> (i32, i32) {
    %c0_i32 = arith.constant 0 : i32
    %c0_i32_0 = arith.constant 0 : i32
    return %arg0, %c0_i32 : i32, i32
  }
}

</mosaic_0001>

<bundles_post_ra>
// kernel: positionwise_ffn.1
= control target key start
LH: loop header
LB: loop body
LE: loop exit
PB: predicated region body
PF: predicated region fallthrough
CT: control target
= control target key end

     0   :  { %vm29_vm0 = vcmask 261120   ;;  %s329_s0 = inlined_call_operand.vmem [shape: f32[16,32], index: 0, kind: input, shape index: {}]   ;;  %s330_s1 = inlined_call_operand.vmem [shape: f32[32,64], index: 1, kind: input, shape index: {}]   ;;  %s331_s2 = inlined_call_operand.vmem [shape: f32[64,32], index: 2, kind: input, shape index: {}]   ;;  %s332_s3 = inlined_call_operand.vmem [shape: f32[4,64], index: 3, kind: input, shape index: {}]   ;;  %s333_s4 = inlined_call_operand.hbm [shape: f32[16,32], index: 4, kind: output, shape index: {}]  }
   0x1   :  { %v27_v0 = vld [vmem:[%s330_s1 + $0x18] sm:$0xff]  ;;  %v26_v1 = vld [vmem:[%s330_s1 + $0x10] sm:$0xff]  ;;  %v25_v2 = vld [vmem:[%s330_s1 + $0x8] sm:$0xff] }
   0x2   :  { %48 = vmatpush.msra.mxu0 %v27_v0  ;;  %183 = vmatpush.msra.mxu3 %v27_v0  ;;  %v68_v3 = vld [vmem:[%s331_s2 + $0x38] sm:$0xff]  ;;  %v24_v4 = vld [vmem:[%s330_s1] sm:$0xff]  ;;  %v67_v5 = vld [vmem:[%s331_s2 + $0x30] sm:$0xff] }
   0x3   :  { %v18_v6 = vld [vmem:[%s329_s0] sm:$0xff]  ;;  %85 = vmatpush.msra.mxu1 %v68_v3  ;;  %187 = vmatpush.msra.mxu2 %v68_v3  ;;  %v19_v7 = vld [vmem:[%s329_s0 + $0x8] sm:$0xff] }
   0x4   :  { %49 = vmatpush.msra.mxu0 %v26_v1  ;;  %184 = vmatpush.msra.mxu3 %v26_v1 }
   0x6   :  { %50 = vmatpush.msra.mxu0 %v25_v2  ;;  %185 = vmatpush.msra.mxu3 %v25_v2 }
   0x7   :  { %9 = vsyncpa [#allocation3], 0  ;;  %86 = vmatpush.msra.mxu1 %v67_v5  ;;  %v66_v8 = vld [vmem:[%s331_s2 + $0x28] sm:$0xff]  ;;  %188 = vmatpush.msra.mxu2 %v67_v5  ;;  %v65_v9 = vld [vmem:[%s331_s2 + $0x20] sm:$0xff]  ;;  %vm70_vm1 = vcmask 523264   ;;  %v235_v30 = vmov 32.0  }
   0x8   :  { %51 = vmatpush.msra.mxu0 %v24_v4  ;;  %186 = vmatpush.msra.mxu3 %v24_v4  ;;  %v64_v10 = vld [vmem:[%s331_s2 + $0x18] sm:$0xff]  ;;  %v63_v11 = vld [vmem:[%s331_s2 + $0x10] sm:$0xff]  ;;  %v62_v12 = vld [vmem:[%s331_s2 + $0x8] sm:$0xff]  ;;  %203 = vrcp.f32 %v235_v30  ;;  %s236_s22 = smov [#allocation2]   ;;  %s237_s26 = smov 128  }
   0x9   :  { %179 = vmatmul.msk.f32.vlgmr.msra.gmra.mxu0 %vm29_vm0, %v18_v6  ;;  %180 = vmatmul.msk.f32.vlgmr.msra.gmra.mxu3 %vm29_vm0, %v19_v7  ;;  %v61_v13 = vld [vmem:[%s331_s2] sm:$0xff]  ;;  %s165_s23 = sshll.u32 %s236_s22, 4  ;;  %s238_s27 = smov 8   ;;  %s166_s23 = int_to_ptr.vmem [resolvable:$true] %s165_s23 }
   0xa   :  { %87 = vmatpush.msra.mxu1 %v66_v8  ;;  %189 = vmatpush.msra.mxu2 %v66_v8  ;;  %v199_v14 = vld [vmem:[%s332_s3] ss:$0 sm:$0xff]  ;;  %v200_v21 = vld [vmem:[%s332_s3 + $0x1] ss:$0 sm:$0xff]  ;;  %v201_v59 = vld [vmem:[%s332_s3 + $0x2] ss:$0 sm:$0xff] }
   0xb   :  { %v202_v63 = vld [vmem:[%s332_s3 + $0x3] ss:$0 sm:$0xff]  ;;  %s167_s3 = sshll.u32 %s333_s4, 4  ;;  %s168_s3 = int_to_ptr.hbm [resolvable:$true] %s167_s3 }
   0xc   :  { %88 = vmatpush.msra.mxu1 %v65_v9  ;;  %190 = vmatpush.msra.mxu2 %v65_v9 }
   0xe   :  { %89 = vmatpush.msra.mxu1 %v64_v10  ;;  %191 = vmatpush.msra.mxu2 %v64_v10  ;;  %v204_v31 = vpop.eup %203 }
   0xf   :  { %v109_v32 = vmul.f32 32.0, %v204_v31  ;;  %vm113_vm2 = vweird.f32 %v204_v31 }
  0x10   :  { %90 = vmatpush.msra.mxu1 %v63_v11  ;;  %192 = vmatpush.msra.mxu2 %v63_v11 }
  0x11   :  { %v110_v33 = vsub.f32 1.0, %v109_v32 }
  0x12   :  { %91 = vmatpush.msra.mxu1 %v62_v12  ;;  %193 = vmatpush.msra.mxu2 %v62_v12 }
  0x13   :  { %v111_v34 = vmul.f32 %v204_v31, %v110_v33 }
  0x14   :  { %92 = vmatpush.msra.mxu1 %v61_v13  ;;  %194 = vmatpush.msra.mxu2 %v61_v13 }
  0x15   :  { %v112_v35 = vadd.f32 %v204_v31, %v111_v34 }
  0x17   :  { %v114_v36 = vsel %vm113_vm2, %v204_v31, %v112_v35 }
  0x86   :  { %v53_v15 = vpop.f32.mrf.mxu0 }
  0x87   :  { %v54_v16 = vadd.f32 %v199_v14, %v53_v15 }
  0x89   :  { %v59_v17 = vmax.f32 %v54_v16, 0.0 }
  0x8b   :  { %181 = vmatmul.msk.f32.vlgmr.msra.gmra.mxu1 %vm70_vm1, %v59_v17 }
  0x8c   :  { %v56_v18 = vpop.f32.mrf.mxu3 }
  0x8d   :  { %v57_v19 = vadd.f32 %v199_v14, %v56_v18 }
  0x8f   :  { %v60_v20 = vmax.f32 %v57_v19, 0.0 }
  0x91   :  { %182 = vmatmul.msk.f32.vlgmr.msra.gmra.mxu2 %vm70_vm1, %v60_v20 }
 0x108   :  { %v94_v22 = vpop.f32.mrf.mxu1 }
 0x109   :  { %v95_v23 = vadd.f32 %v200_v21, %v94_v22 }
 0x10b   :  { %v100_v24 = vadd.f32 %v95_v23, %v18_v6 }
 0x10d   :  { %v102_v25 = vsel %vm29_vm0, %v100_v24, 0.0 }
 0x10e   :  { %103 = vadd.xlane.f32.xlu0 %v102_v25 }
 0x114   :  { %v97_v26 = vpop.f32.mrf.mxu2 }
 0x115   :  { %v98_v27 = vadd.f32 %v200_v21, %v97_v26 }
 0x117   :  { %v101_v28 = vadd.f32 %v98_v27, %v19_v7 }
 0x119   :  { %v105_v29 = vsel %vm29_vm0, %v101_v28, 0.0 }
 0x11a   :  { %106 = vadd.xlane.f32.xlu0 %v105_v29 }
 0x181   :  { %v104_v37 = vpop.xlane.xlu0 %103 }
 0x182   :  { %v115_v38 = vmul.f32 %v114_v36, %v104_v37 }
 0x184   :  { %v117_v39 = vsub.f32 %v100_v24, %v115_v38 }
 0x186   :  { %v119_v40 = vmul.f32 %v117_v39, %v117_v39 }
 0x188   :  { %v121_v41 = vsel %vm29_vm0, %v119_v40, 0.0 }
 0x189   :  { %122 = vadd.xlane.f32.xlu1 %v121_v41 }
 0x18d   :  { %v107_v42 = vpop.xlane.xlu0 %106 }
 0x18e   :  { %v116_v43 = vmul.f32 %v114_v36, %v107_v42 }
 0x190   :  { %v118_v44 = vsub.f32 %v101_v28, %v116_v43 }
 0x192   :  { %v120_v45 = vmul.f32 %v118_v44, %v118_v44 }
 0x194   :  { %v124_v46 = vsel %vm29_vm0, %v120_v45, 0.0 }
 0x195   :  { %125 = vadd.xlane.f32.xlu1 %v124_v46 }
 0x1fc   :  { %v123_v47 = vpop.xlane.xlu1 %122 }
 0x1fd   :  { %v127_v48 = vmul.f32 %v123_v47, %v114_v36 }
 0x1ff   :  { %v129_v49 = vadd.f32 1e-06, %v127_v48 }
 0x201   :  { %205 = vrsqrt.f32 %v129_v49  ;;  %vm137_vm4 = vweird.f32 %v129_v49 }
 0x207   :  { %v206_v50 = vpop.eup %205 }
 0x208   :  { %v132_v51 = vmul.f32 %v206_v50, %v129_v49  ;;  %v126_v52 = vpop.xlane.xlu1 %125  ;;  %vm138_vm3 = vweird.f32 %v206_v50 }
 0x209   :  { %v128_v53 = vmul.f32 %v126_v52, %v114_v36  ;;  %vm139_vm5 = vmor %vm137_vm4, %vm138_vm3 }
 0x20a   :  { %v133_v54 = vmul.f32 %v206_v50, %v132_v51 }
 0x20b   :  { %v130_v55 = vadd.f32 1e-06, %v128_v53 }
 0x20c   :  { %v134_v56 = vmul.f32 0.5, %v133_v54 }
 0x20d   :  { %207 = vrsqrt.f32 %v130_v55  ;;  %vm147_vm7 = vweird.f32 %v130_v55 }
 0x20e   :  { %v135_v57 = vsub.f32 1.5, %v134_v56 }
 0x210   :  { %v136_v58 = vmul.f32 %v206_v50, %v135_v57 }
 0x212   :  { %v140_v60 = vsel %vm139_vm5, %v206_v50, %v136_v58 }
 0x213   :  { %v208_v61 = vpop.eup %207  ;;  %v151_v62 = vmul.f32 %v140_v60, %v117_v39 }
 0x214   :  { %v142_v0 = vmul.f32 %v208_v61, %v130_v55  ;;  %vm148_vm6 = vweird.f32 %v208_v61 }
 0x215   :  { %v154_v1 = vmul.f32 %v201_v59, %v151_v62  ;;  %vm149_vm8 = vmor %vm147_vm7, %vm148_vm6 }
 0x216   :  { %v143_v2 = vmul.f32 %v208_v61, %v142_v0 }
 0x217   :  { %v157_v3 = vadd.f32 %v202_v63, %v154_v1 }
 0x218   :  { %v144_v4 = vmul.f32 0.5, %v143_v2 }
 0x219   :  { %159 = vst.msk [vmem:[#allocation2] sm:$0xff] %vm29_vm0, %v157_v3 }
 0x21a   :  { %v145_v5 = vsub.f32 1.5, %v144_v4 }
 0x21c   :  { %v146_v6 = vmul.f32 %v208_v61, %v145_v5 }
 0x21e   :  { %v150_v7 = vsel %vm149_vm8, %v208_v61, %v146_v6 }
 0x21f   :  { %v152_v8 = vmul.f32 %v150_v7, %v118_v44 }
 0x221   :  { %v155_v9 = vmul.f32 %v201_v59, %v152_v8 }
 0x223   :  { %v158_v10 = vadd.f32 %v202_v63, %v155_v9 }
 0x225   :  { %160 = vst.msk [vmem:[#allocation2 + $0x8] sm:$0xff] %vm29_vm0, %v158_v10 }
 0x226   :  { %173 = dma.vmem_to_hbm [thread:$0]  %s166_s23, 256, %s168_s3, [#allocation3], %s237_s26, %s237_s26, %s238_s27  }
 0x227   :  { %233 = dma.done.wait [#allocation3], 256  }
 0x228   :  { %234 = vsyncadd [#allocation3], 4294967040 }
 0x229   :  { %178 = vsyncpa [#allocation3], 1 }

</bundles_post_ra>
